<compile_context>
chip_gen: v5e
topology: v5e:2x2
jax: 0.10.0
libtpu: 0.0.40
codegen_flags: <defaults>
</compile_context>

<pallas_src>
import jax
import jax.numpy as jnp
from jax.experimental import pallas as pl
from jax.experimental.pallas import tpu as pltpu


_LANES = 512            # lane-dense last dim (multiple of 128)
_MAX_ROW_BLOCK = 512    # 512x512 f32 tile = 1 MiB; 2x(in+out) double-buffers ~4 MiB
_MIN_PALLAS_ELEMENTS = 1 << 16  # below this, let XLA fuse the scale+shift


def _final_layer_kernel(x_ref, o_ref, *, inv_norm, bias):
    # Elementwise: scale by inverse temperature, shift by constant bias.
    o_ref[...] = x_ref[...] * inv_norm + bias


def _round_up(x, m):
    return ((x + m - 1) // m) * m


def final_layer(in_tensor, norm=1.0, bias=-5.0, *, force_pallas=False):
    """JAX/Pallas equivalent of FinalLayer.forward.

    Args:
      in_tensor: array of shape (N, C, ...) where all trailing dims are 1
                 (e.g. (N, C, 1, 1) NCHW), or already (N, C).
      norm: inverse temperature T^{-1} (divide by this).
      bias: constant shift in logit space.
      force_pallas: run the Pallas kernel even for tiny inputs (testing).

    Returns:
      (N, C) array, same dtype as input.
    """
    assert norm != 0, "Norm 0 not supported (see original module assert)."
    n, c = in_tensor.shape[:2]

    # Enforce the PyTorch view(*shape[:2]) contract: trailing dims collapse to 1.
    trailing = 1
    for d in in_tensor.shape[2:]:
        trailing *= d
    assert trailing == 1, (
        f"FinalLayer expects trailing dims of size 1, got shape {in_tensor.shape}"
    )
    x2d = jnp.reshape(in_tensor, (n, c))

    # Traced norm/bias cannot be baked into the kernel as constants; the op is
    # trivial, so just let XLA handle that case.
    static_scalars = isinstance(norm, (int, float)) and isinstance(bias, (int, float))
    if not static_scalars:
        return x2d / norm + bias

    inv_norm = 1.0 / float(norm)
    bias_f = float(bias)
    total = n * c

    # Tiny inputs: a standalone pallas_call is pure launch+DMA overhead.
    if total < _MIN_PALLAS_ELEMENTS and not force_pallas:
        return x2d * inv_norm + bias_f

    dtype = x2d.dtype
    itemsize = jnp.dtype(dtype).itemsize
    sublane = max(8, 32 // itemsize)  # 8 for f32, 16 for bf16, 32 for int8

    rows = pl.cdiv(total, _LANES)
    if rows <= _MAX_ROW_BLOCK:
        # Single block covering the whole (padded) slab.
        row_block = _round_up(rows, sublane)
        rows_padded = row_block
    else:
        row_block = _MAX_ROW_BLOCK
        rows_padded = _round_up(rows, row_block)
    padded_total = rows_padded * _LANES

    flat = jnp.reshape(x2d, (total,))
    if padded_total != total:
        flat = jnp.pad(flat, (0, padded_total - total))
    slab = jnp.reshape(flat, (rows_padded, _LANES))

    grid = (rows_padded // row_block,)

    kernel = lambda x_ref, o_ref: _final_layer_kernel(
        x_ref, o_ref, inv_norm=inv_norm, bias=bias_f
    )

    out_slab = pl.pallas_call(
        kernel,
        out_shape=jax.ShapeDtypeStruct((rows_padded, _LANES), dtype),
        grid=grid,
        in_specs=[pl.BlockSpec((row_block, _LANES), lambda i: (i, 0))],
        out_specs=pl.BlockSpec((row_block, _LANES), lambda i: (i, 0)),
        compiler_params=pltpu.CompilerParams(
            # Independent row tiles: shard across TensorCores on v7x;
            # harmless no-op on single-TC v5e/v6e.
            dimension_semantics=("parallel",)
        ),
    )(slab)

    out = jnp.reshape(jnp.reshape(out_slab, (padded_total,))[:total], (n, c))
    return out


if __name__ == "__main__":
    key = jax.random.PRNGKey(0)
    k1, k2 = jax.random.split(key)

    # Case 1: the canonical tiny FinalLayer input (N, C, 1, 1). Force the
    # Pallas path so the kernel itself is exercised (single padded block).
    N1, C1 = 2, 4
    x_small = jax.random.normal(k1, (N1, C1, 1, 1), dtype=jnp.float32)
    norm1, bias1 = 2.0, -5.0
    out1 = final_layer(x_small, norm=norm1, bias=bias1, force_pallas=True)
    out1 = jax.block_until_ready(out1)
    ref1 = jnp.reshape(x_small, (N1, C1)) / norm1 + bias1
    assert out1.shape == (N1, C1)
    assert jnp.allclose(out1, ref1, atol=1e-6, rtol=1e-6), "small-case mismatch"

    # Case 2: larger slab exercising padding + multi-block tiled grid
    # (rows > 512 -> grid of 2 parallel row tiles).
    N2, C2 = 300, 1000
    x_large = jax.random.normal(k2, (N2, C2, 1, 1), dtype=jnp.float32)
    norm2, bias2 = 3.0, -5.0
    out2 = final_layer(x_large, norm=norm2, bias=bias2)
    out2 = jax.block_until_ready(out2)
    ref2 = jnp.reshape(x_large, (N2, C2)) / norm2 + bias2
    assert out2.shape == (N2, C2)
    assert jnp.allclose(out2, ref2, atol=1e-5, rtol=1e-5), "large-case mismatch"

    print("KERNEL_OK")
</pallas_src>

<mosaic_0001>
module attributes {stable_mosaic.version = 11 : i64} {
  func.func @_lambda_(%arg0: i32, %arg1: memref<8x512xf32, #tpu.memory_space<vmem>>, %arg2: memref<8x512xf32, #tpu.memory_space<vmem>>) attributes {dimension_semantics = [#tpu.dimension_semantics<parallel>], iteration_bounds = array<i64: 1>, scalar_prefetch = 0 : i64, scratch_operands = 0 : i64, tpu.core_type = #tpu.core_type<tc>, window_params = [{transform_indices = @transform_0, window_bounds = array<i64: 8, 512>}, {transform_indices = @transform_1, window_bounds = array<i64: 8, 512>}]} {
    %c0 = arith.constant 0 : index
    %c0_0 = arith.constant 0 : index
    %0 = vector.load %arg1[%c0, %c0_0] : memref<8x512xf32, #tpu.memory_space<vmem>>, vector<8x512xf32>
    %cst = arith.constant 5.000000e-01 : f32
    %1 = vector.broadcast %cst : f32 to vector<8x512xf32>
    %2 = arith.mulf %0, %1 : vector<8x512xf32>
    %cst_1 = arith.constant -5.000000e+00 : f32
    %3 = vector.broadcast %cst_1 : f32 to vector<8x512xf32>
    %4 = arith.addf %2, %3 : vector<8x512xf32>
    %c0_2 = arith.constant 0 : index
    %c0_3 = arith.constant 0 : index
    %5 = vector.load %arg2[%c0_2, %c0_3] : memref<8x512xf32, #tpu.memory_space<vmem>>, vector<8x512xf32>
    tpu.vector_store %arg2[%c0_2, %c0_3], %4 {strides = array<i32>} : memref<8x512xf32, #tpu.memory_space<vmem>>, vector<8x512xf32>,
    return
  }
  func.func @transform_0(%arg0: i32) -> (i32, i32) {
    %c0_i32 = arith.constant 0 : i32
    %c0_i32_0 = arith.constant 0 : i32
    return %arg0, %c0_i32 : i32, i32
  }
  func.func @transform_1(%arg0: i32) -> (i32, i32) {
    %c0_i32 = arith.constant 0 : i32
    %c0_i32_0 = arith.constant 0 : i32
    return %arg0, %c0_i32 : i32, i32
  }
}

</mosaic_0001>

<bundles_post_ra>
// kernel: tpu_custom_call.1
= control target key start
LH: loop header
LB: loop body
LE: loop exit
PB: predicated region body
PF: predicated region fallthrough
CT: control target
= control target key end

     0   :  { %6 = vsyncpa [#allocation3], 0  ;;  %s128_s0 = inlined_call_operand.hbm [shape: f32[8,512], index: 0, kind: input, shape index: {}]   ;;  %s129_s1 = inlined_call_operand.hbm [shape: f32[8,512], index: 1, kind: output, shape index: {}]  }
   0x1   :  { %7 = vsyncpa [#allocation4], 0  ;;  %s13_s8 = sshll.u32 %s128_s0, 4  ;;  %s110_s9 = smov [#allocation2]   ;;  %s14_s8 = int_to_ptr.hbm [resolvable:$true] %s13_s8 }
   0x2   :  { %s15_s10 = sshll.u32 %s110_s9, 4  ;;  %s16_s10 = int_to_ptr.vmem [resolvable:$true] %s15_s10 }
   0x3   :  { %18 = dma.hbm_to_vmem [thread:$0]  %s14_s8, 512, %s16_s10, [#allocation3]  }
   0x4   :  { %106 = dma.done.wait [#allocation3], 512  }
   0x5   :  { %107 = vsyncadd [#allocation3], 4294966784  ;;  %v23_v0 = vld [vmem:[#allocation2] sm:$0xff]  ;;  %v24_v1 = vld [vmem:[#allocation2 + $0x8] sm:$0xff]  ;;  %s111_s11 = smov [#allocation5]   ;;  %s46_s14 = sshll.u32 %s129_s1, 4  ;;  %s47_s14 = int_to_ptr.hbm [resolvable:$true] %s46_s14 }
   0x6   :  { %v25_v2 = vld [vmem:[#allocation2 + $0x10] sm:$0xff]  ;;  %v27_v3 = vmul.f32 0.5, %v23_v0  ;;  %v28_v4 = vmul.f32 0.5, %v24_v1  ;;  %v26_v6 = vld [vmem:[#allocation2 + $0x18] sm:$0xff]  ;;  %s44_s0 = sshll.u32 %s111_s11, 4  ;;  %s45_s0 = int_to_ptr.vmem [resolvable:$true] %s44_s0 }
   0x7   :  { %v29_v5 = vmul.f32 0.5, %v25_v2  ;;  %v30_v7 = vmul.f32 0.5, %v26_v6 }
   0x8   :  { %v31_v8 = vadd.f32 -5.0, %v27_v3  ;;  %v32_v9 = vadd.f32 -5.0, %v28_v4 }
   0x9   :  { %v33_v10 = vadd.f32 -5.0, %v29_v5  ;;  %v34_v11 = vadd.f32 -5.0, %v30_v7 }
   0xa   :  { %35 = vst [vmem:[#allocation5] sm:$0xff] %v31_v8 }
   0xb   :  { %36 = vst [vmem:[#allocation5 + $0x8] sm:$0xff] %v32_v9 }
   0xc   :  { %37 = vst [vmem:[#allocation5 + $0x10] sm:$0xff] %v33_v10 }
   0xd   :  { %38 = vst [vmem:[#allocation5 + $0x18] sm:$0xff] %v34_v11 }
   0xe   :  { %49 = dma.vmem_to_hbm [thread:$0]  %s45_s0, 512, %s47_s14, [#allocation4]  }
   0xf   :  { %108 = dma.done.wait [#allocation4], 512  }
  0x10   :  { %109 = vsyncadd [#allocation4], 4294966784 }
  0x11   :  { %54 = vsyncpa [#allocation3], 1 }
  0x12   :  { %55 = vsyncpa [#allocation4], 1 }

</bundles_post_ra>
